<compile_context>
chip_gen: v7x
topology: tpu7x:2x2x1
jax: 0.10.0
libtpu: 0.0.40
codegen_flags: <defaults>
</compile_context>

<pallas_src>
import functools
import math

import jax
import jax.numpy as jnp
from jax import lax
from jax.experimental import pallas as pl
from jax.experimental.pallas import tpu as pltpu


_MAX_FOLDED_WIDTH = 1024   # block-diagonal fold matrix capped at 1024x1024


# --------------------------------------------------------------------------
# Kernels
# --------------------------------------------------------------------------
def _layernorm_rowwise_kernel(x_ref, gamma_ref, beta_ref, o_ref, *, eps: float):
    """One length-`hidden` normalization per row; lane (XLU) reductions."""
    x = x_ref[...].astype(jnp.float32)                     # (tile_rows, H)
    n = x.shape[-1]
    inv_nm1 = (1.0 / (n - 1)) if n > 1 else float("nan")   # torch unbiased var
    mean = jnp.mean(x, axis=-1, keepdims=True)
    var = jnp.sum((x - mean) ** 2, axis=-1, keepdims=True) * inv_nm1
    # exact PyTorch expression (precedence quirk preserved):
    #   x = x - mean / sqrt(var + e)
    y = x - mean * lax.rsqrt(var + eps)                    # EUP rsqrt (free slot)
    o_ref[...] = (gamma_ref[...].astype(jnp.float32) * y
                  + beta_ref[...].astype(jnp.float32)).astype(o_ref.dtype)


def _mxu_exact_f32_matmul(a_f32, b_bf16):
    """f32-accurate `a @ b` on the MXU via a bf16 3-way split of `a`.

    `b` holds exact 0/1 values, so the only rounding is the split of `a`
    (~2^-25 relative) plus f32 accumulation -- independent of the backend's
    default matmul precision.
    """
    hi = a_f32.astype(jnp.bfloat16)
    r1 = a_f32 - hi.astype(jnp.float32)
    mid = r1.astype(jnp.bfloat16)
    lo = (r1 - mid.astype(jnp.float32)).astype(jnp.bfloat16)
    acc = jnp.dot(hi, b_bf16, preferred_element_type=jnp.float32)
    acc = acc + jnp.dot(mid, b_bf16, preferred_element_type=jnp.float32)
    acc = acc + jnp.dot(lo, b_bf16, preferred_element_type=jnp.float32)
    return acc


def _layernorm_folded_kernel(x_ref, gamma_ref, beta_ref, b_ref, o_ref, *,
                             eps: float, seg: int):
    """k independent length-`seg` segments per (lane-dense) row.

    b_ref is a (k*seg, k*seg) block-diagonal 0/1 matrix: x @ B yields each
    segment's sum broadcast across its own lanes, so both reductions run on
    the otherwise-idle MXU and stores stay unmasked full-width vst's.
    """
    x = x_ref[...].astype(jnp.float32)                     # (tile_rows, k*seg)
    b = b_ref[...]                                         # bf16 0/1 matrix
    inv_n = 1.0 / seg
    inv_nm1 = (1.0 / (seg - 1)) if seg > 1 else float("nan")
    mean = _mxu_exact_f32_matmul(x, b) * inv_n             # segment mean, in place
    xc = x - mean
    var = _mxu_exact_f32_matmul(xc * xc, b) * inv_nm1      # centered two-pass var
    y = x - mean * lax.rsqrt(var + eps)                    # precedence quirk kept
    o_ref[...] = (gamma_ref[...].astype(jnp.float32) * y
                  + beta_ref[...].astype(jnp.float32)).astype(o_ref.dtype)


# --------------------------------------------------------------------------
# Host-side sizing helpers
# --------------------------------------------------------------------------
def _vmem_capacity_bytes() -> int:
    try:
        return int(pltpu.get_tpu_info().vmem_capacity_bytes)
    except Exception:
        return 128 * 1024 * 1024      # v5e/v6e default; v7x is 64 MiB per TC


def _row_axis_semantics():
    """CORE_PARALLEL on v7x (2 TCs/chip) so the row grid is really sharded;
    plain "parallel" elsewhere (measured near-no-op there, but harmless)."""
    try:
        kind = jax.devices()[0].device_kind.lower()
    except Exception:
        kind = ""
    if "v7" in kind or "7x" in kind:
        return (pltpu.CORE_PARALLEL,)
    return ("parallel",)


def _fold_factor(rows: int, hidden: int) -> int:
    """Rows folded into the lane axis so the last dim is a multiple of 128."""
    if hidden % 128 == 0:
        return 1
    k = 128 // math.gcd(hidden, 128)
    if rows % k == 0 and k * hidden <= _MAX_FOLDED_WIDTH:
        return k
    return 1


def _pick_tile_rows(rows: int, width: int, in_itemsize: int,
                    vmem_capacity: int, max_tile_rows: int) -> int:
    """Largest row tile whose f32 working set fits a generation-aware budget."""
    big_vmem = vmem_capacity >= 96 * 1024 * 1024
    tile_budget = (12 if big_vmem else 6) * 1024 * 1024
    row_bytes = max(1, width * max(in_itemsize, 4))     # f32 working set per row
    budget_rows = max(16, (tile_budget // row_bytes) // 16 * 16)
    budget_rows = min(budget_rows, max_tile_rows)
    if rows <= budget_rows:
        return rows            # block == full array extent: always a legal shape
    return budget_rows         # multiple of 16 (covers bf16 (16,128) tiling)


def _vmem_limit_bytes(tile_rows: int, width: int, in_itemsize: int,
                      const_bytes: int, vmem_capacity: int) -> int:
    io_tile = tile_rows * width * in_itemsize
    f32_tile = tile_rows * width * 4
    need = 2 * io_tile          # x, double-buffered
    need += 2 * io_tile         # out, double-buffered
    need += 3 * f32_tile        # f32 upcast + fused intermediates
    need += 2 * const_bytes     # gamma/beta (+ fold matrix), constant index_map
    need += 2 * 1024 * 1024     # slack
    cap = (96 if vmem_capacity >= 96 * 1024 * 1024 else 52) * 1024 * 1024
    return int(min(cap, max(32 * 1024 * 1024, need)))


# --------------------------------------------------------------------------
# pallas_call wrappers
# --------------------------------------------------------------------------
def _run_rowwise(x2, gamma2, beta2, eps, max_tile_rows, semantics):
    rows, hidden = x2.shape
    itemsize = jnp.dtype(x2.dtype).itemsize
    vmem_cap = _vmem_capacity_bytes()
    tile_rows = _pick_tile_rows(rows, hidden, itemsize, vmem_cap, max_tile_rows)
    grid = (pl.cdiv(rows, tile_rows),)
    vmem_limit = _vmem_limit_bytes(tile_rows, hidden, itemsize,
                                   2 * hidden * itemsize, vmem_cap)
    return pl.pallas_call(
        functools.partial(_layernorm_rowwise_kernel, eps=eps),
        out_shape=jax.ShapeDtypeStruct((rows, hidden), x2.dtype),
        grid_spec=pltpu.PrefetchScalarGridSpec(
            num_scalar_prefetch=0,
            grid=grid,
            in_specs=[
                pl.BlockSpec((tile_rows, hidden), lambda i: (i, 0)),
                pl.BlockSpec((1, hidden), lambda i: (0, 0)),
                pl.BlockSpec((1, hidden), lambda i: (0, 0)),
            ],
            out_specs=pl.BlockSpec((tile_rows, hidden), lambda i: (i, 0)),
        ),
        compiler_params=pltpu.CompilerParams(
            dimension_semantics=semantics,
            vmem_limit_bytes=vmem_limit),
    )(x2, gamma2, beta2)


def _run_folded(x2, gamma2, beta2, eps, k, max_tile_rows, semantics):
    rows, hidden = x2.shape
    width = k * hidden                       # multiple of 128: lane-dense I/O
    rows_f = rows // k
    xf = x2.reshape(rows_f, width)           # row r, seg s  <-  original row r*k+s
    gamma_f = jnp.tile(gamma2, (1, k))
    beta_f = jnp.tile(beta2, (1, k))
    seg_ids = jnp.arange(width, dtype=jnp.int32) // hidden
    bmat = (seg_ids[:, None] == seg_ids[None, :]).astype(jnp.bfloat16)

    itemsize = jnp.dtype(x2.dtype).itemsize
    vmem_cap = _vmem_capacity_bytes()
    tile_rows = _pick_tile_rows(rows_f, width, itemsize, vmem_cap, max_tile_rows)
    grid = (pl.cdiv(rows_f, tile_rows),)
    const_bytes = width * width * 2 + 2 * width * itemsize
    vmem_limit = _vmem_limit_bytes(tile_rows, width, itemsize, const_bytes,
                                   vmem_cap)
    out = pl.pallas_call(
        functools.partial(_layernorm_folded_kernel, eps=eps, seg=hidden),
        out_shape=jax.ShapeDtypeStruct((rows_f, width), x2.dtype),
        grid_spec=pltpu.PrefetchScalarGridSpec(
            num_scalar_prefetch=0,
            grid=grid,
            in_specs=[
                pl.BlockSpec((tile_rows, width), lambda i: (i, 0)),
                pl.BlockSpec((1, width), lambda i: (0, 0)),
                pl.BlockSpec((1, width), lambda i: (0, 0)),
                pl.BlockSpec((width, width), lambda i: (0, 0)),
            ],
            out_specs=pl.BlockSpec((tile_rows, width), lambda i: (i, 0)),
        ),
        compiler_params=pltpu.CompilerParams(
            dimension_semantics=semantics,
            vmem_limit_bytes=vmem_limit),
    )(xf, gamma_f, beta_f, bmat)
    return out.reshape(rows, hidden)


def layer_norm(x: jax.Array, gamma: jax.Array, beta: jax.Array,
               eps: float = 1e-5, max_tile_rows: int = 4096) -> jax.Array:
    """Applies the (quirky) LayerNorm from src/Norm.py over the last axis."""
    orig_shape = x.shape
    hidden = orig_shape[-1]
    rows = int(math.prod(orig_shape[:-1]))
    x2 = x.reshape(rows, hidden)
    gamma2 = gamma.reshape(1, hidden)
    beta2 = beta.reshape(1, hidden)

    k = _fold_factor(rows, hidden)
    semantics = _row_axis_semantics()
    try:
        if k > 1:
            out = _run_folded(x2, gamma2, beta2, eps, k, max_tile_rows, semantics)
        else:
            out = _run_rowwise(x2, gamma2, beta2, eps, max_tile_rows, semantics)
    except Exception:
        # Conservative guard: if an aggressive config (CORE_PARALLEL, lane
        # folding, ...) fails to lower on this TPU generation, fall back to the
        # known-good row-wise kernel with "arbitrary" semantics.
        out = _run_rowwise(x2, gamma2, beta2, eps, max_tile_rows, ("arbitrary",))
    return out.reshape(orig_shape)


# --------------------------------------------------------------------------
# Demo / self-test
# --------------------------------------------------------------------------
if __name__ == "__main__":
    key = jax.random.PRNGKey(0)
    k1, k2 = jax.random.split(key)

    def _ref_forward(x, gamma, beta, eps):
        n = x.shape[-1]
        mean = jnp.mean(x, axis=-1, keepdims=True)
        var = jnp.sum((x - mean) ** 2, axis=-1, keepdims=True) / (n - 1)
        return gamma * (x - mean / jnp.sqrt(var + eps)) + beta

    # Shapes implied by the module: (batch, seq, hidden), hidden = out_features.
    batch, seq, hidden = 2, 8, 32
    x = jax.random.normal(k1, (batch, seq, hidden), dtype=jnp.float32)
    gamma = jnp.ones((hidden,), dtype=jnp.float32)    # nn.Parameter(torch.ones)
    beta = jnp.zeros((hidden,), dtype=jnp.float32)    # nn.Parameter(torch.zeros)

    out = layer_norm(x, gamma, beta, eps=1e-5)        # lane-folded path (H=32)
    jax.block_until_ready(out)
    ref = _ref_forward(x, gamma, beta, 1e-5)
    assert out.shape == x.shape
    assert jnp.allclose(out, ref, atol=2e-5, rtol=2e-5), "folded path mismatch"

    # Second small config exercising the row-wise lane-dense path (H % 128 == 0).
    hidden2 = 256
    xb = jax.random.normal(k2, (3, 5, hidden2), dtype=jnp.float32)
    gamma_b = jnp.ones((hidden2,), dtype=jnp.float32)
    beta_b = jnp.zeros((hidden2,), dtype=jnp.float32)
    out_b = layer_norm(xb, gamma_b, beta_b, eps=1e-5)
    jax.block_until_ready(out_b)
    ref_b = _ref_forward(xb, gamma_b, beta_b, 1e-5)
    assert jnp.allclose(out_b, ref_b, atol=2e-5, rtol=2e-5), "row-wise mismatch"

    print("KERNEL_OK")
</pallas_src>

<mosaic_0001>
module attributes {stable_mosaic.version = 11 : i64} {
  func.func @_layernorm_folded_kernel(%arg0: i32, %arg1: memref<4x128xf32, #tpu.memory_space<vmem>>, %arg2: memref<1x128xf32, #tpu.memory_space<vmem>>, %arg3: memref<1x128xf32, #tpu.memory_space<vmem>>, %arg4: memref<128x128xbf16, #tpu.memory_space<vmem>>, %arg5: memref<4x128xf32, #tpu.memory_space<vmem>>) attributes {dimension_semantics = [#tpu.dimension_semantics<parallel>], iteration_bounds = array<i64: 1>, scalar_prefetch = 0 : i64, scratch_operands = 0 : i64, tpu.core_type = #tpu.core_type<tc>, window_params = [{transform_indices = @transform_0, window_bounds = array<i64: 4, 128>}, {pipeline_mode = #tpu.pipeline_mode<synchronous>, transform_indices = @transform_1, window_bounds = array<i64: 1, 128>}, {pipeline_mode = #tpu.pipeline_mode<synchronous>, transform_indices = @transform_2, window_bounds = array<i64: 1, 128>}, {pipeline_mode = #tpu.pipeline_mode<synchronous>, transform_indices = @transform_3, window_bounds = array<i64: 128, 128>}, {transform_indices = @transform_4, window_bounds = array<i64: 4, 128>}]} {
    %c0 = arith.constant 0 : index
    %c0_0 = arith.constant 0 : index
    %0 = vector.load %arg1[%c0, %c0_0] : memref<4x128xf32, #tpu.memory_space<vmem>>, vector<4x128xf32>
    %c0_1 = arith.constant 0 : index
    %c0_2 = arith.constant 0 : index
    %1 = vector.load %arg4[%c0_1, %c0_2] : memref<128x128xbf16, #tpu.memory_space<vmem>>, vector<128x128xbf16>
    %2 = arith.truncf %0 : vector<4x128xf32> to vector<4x128xbf16>
    %3 = arith.extf %2 : vector<4x128xbf16> to vector<4x128xf32>
    %4 = arith.subf %0, %3 : vector<4x128xf32>
    %5 = arith.truncf %4 : vector<4x128xf32> to vector<4x128xbf16>
    %6 = arith.extf %5 : vector<4x128xbf16> to vector<4x128xf32>
    %7 = arith.subf %4, %6 : vector<4x128xf32>
    %8 = arith.truncf %7 : vector<4x128xf32> to vector<4x128xbf16>
    %cst = arith.constant dense<0.000000e+00> : vector<4x128xf32>
    %9 = tpu.matmul %2, %1, %cst {dimension_numbers = #tpu.dot_dimension_numbers<[1], [0], [0], [1], [0, 0, 1, 1], [], []>} : vector<4x128xbf16>, vector<128x128xbf16>, vector<4x128xf32> -> vector<4x128xf32>
    %cst_3 = arith.constant dense<0.000000e+00> : vector<4x128xf32>
    %10 = tpu.matmul %5, %1, %cst_3 {dimension_numbers = #tpu.dot_dimension_numbers<[1], [0], [0], [1], [0, 0, 1, 1], [], []>} : vector<4x128xbf16>, vector<128x128xbf16>, vector<4x128xf32> -> vector<4x128xf32>
    %11 = arith.addf %9, %10 : vector<4x128xf32>
    %cst_4 = arith.constant dense<0.000000e+00> : vector<4x128xf32>
    %12 = tpu.matmul %8, %1, %cst_4 {dimension_numbers = #tpu.dot_dimension_numbers<[1], [0], [0], [1], [0, 0, 1, 1], [], []>} : vector<4x128xbf16>, vector<128x128xbf16>, vector<4x128xf32> -> vector<4x128xf32>
    %13 = arith.addf %11, %12 : vector<4x128xf32>
    %cst_5 = arith.constant 3.125000e-02 : f32
    %14 = vector.broadcast %cst_5 : f32 to vector<4x128xf32>
    %15 = arith.mulf %13, %14 : vector<4x128xf32>
    %16 = arith.subf %0, %15 : vector<4x128xf32>
    %17 = arith.mulf %16, %16 : vector<4x128xf32>
    %18 = arith.truncf %17 : vector<4x128xf32> to vector<4x128xbf16>
    %19 = arith.extf %18 : vector<4x128xbf16> to vector<4x128xf32>
    %20 = arith.subf %17, %19 : vector<4x128xf32>
    %21 = arith.truncf %20 : vector<4x128xf32> to vector<4x128xbf16>
    %22 = arith.extf %21 : vector<4x128xbf16> to vector<4x128xf32>
    %23 = arith.subf %20, %22 : vector<4x128xf32>
    %24 = arith.truncf %23 : vector<4x128xf32> to vector<4x128xbf16>
    %cst_6 = arith.constant dense<0.000000e+00> : vector<4x128xf32>
    %25 = tpu.matmul %18, %1, %cst_6 {dimension_numbers = #tpu.dot_dimension_numbers<[1], [0], [0], [1], [0, 0, 1, 1], [], []>} : vector<4x128xbf16>, vector<128x128xbf16>, vector<4x128xf32> -> vector<4x128xf32>
    %cst_7 = arith.constant dense<0.000000e+00> : vector<4x128xf32>
    %26 = tpu.matmul %21, %1, %cst_7 {dimension_numbers = #tpu.dot_dimension_numbers<[1], [0], [0], [1], [0, 0, 1, 1], [], []>} : vector<4x128xbf16>, vector<128x128xbf16>, vector<4x128xf32> -> vector<4x128xf32>
    %27 = arith.addf %25, %26 : vector<4x128xf32>
    %cst_8 = arith.constant dense<0.000000e+00> : vector<4x128xf32>
    %28 = tpu.matmul %24, %1, %cst_8 {dimension_numbers = #tpu.dot_dimension_numbers<[1], [0], [0], [1], [0, 0, 1, 1], [], []>} : vector<4x128xbf16>, vector<128x128xbf16>, vector<4x128xf32> -> vector<4x128xf32>
    %29 = arith.addf %27, %28 : vector<4x128xf32>
    %cst_9 = arith.constant 0.0322580636 : f32
    %30 = vector.broadcast %cst_9 : f32 to vector<4x128xf32>
    %31 = arith.mulf %29, %30 : vector<4x128xf32>
    %cst_10 = arith.constant 9.99999974E-6 : f32
    %32 = vector.broadcast %cst_10 : f32 to vector<4x128xf32>
    %33 = arith.addf %31, %32 : vector<4x128xf32>
    %34 = math.rsqrt %33 : vector<4x128xf32>
    %35 = arith.mulf %15, %34 : vector<4x128xf32>
    %36 = arith.subf %0, %35 : vector<4x128xf32>
    %c0_11 = arith.constant 0 : index
    %c0_12 = arith.constant 0 : index
    %37 = vector.load %arg2[%c0_11, %c0_12] : memref<1x128xf32, #tpu.memory_space<vmem>>, vector<1x128xf32>
    %38 = vector.broadcast %37 : vector<1x128xf32> to vector<4x128xf32>
    %39 = arith.mulf %38, %36 : vector<4x128xf32>
    %c0_13 = arith.constant 0 : index
    %c0_14 = arith.constant 0 : index
    %40 = vector.load %arg3[%c0_13, %c0_14] : memref<1x128xf32, #tpu.memory_space<vmem>>, vector<1x128xf32>
    %41 = vector.broadcast %40 : vector<1x128xf32> to vector<4x128xf32>
    %42 = arith.addf %39, %41 : vector<4x128xf32>
    %c0_15 = arith.constant 0 : index
    %c0_16 = arith.constant 0 : index
    %43 = vector.load %arg5[%c0_15, %c0_16] : memref<4x128xf32, #tpu.memory_space<vmem>>, vector<4x128xf32>
    tpu.vector_store %arg5[%c0_15, %c0_16], %42 {strides = array<i32>} : memref<4x128xf32, #tpu.memory_space<vmem>>, vector<4x128xf32>,
    return
  }
  func.func @transform_0(%arg0: i32) -> (i32, i32) {
    %c0_i32 = arith.constant 0 : i32
    %c0_i32_0 = arith.constant 0 : i32
    return %arg0, %c0_i32 : i32, i32
  }
  func.func @transform_1(%arg0: i32) -> (i32, i32) {
    %c0_i32 = arith.constant 0 : i32
    %c0_i32_0 = arith.constant 0 : i32
    %c0_i32_1 = arith.constant 0 : i32
    return %c0_i32, %c0_i32_0 : i32, i32
  }
  func.func @transform_2(%arg0: i32) -> (i32, i32) {
    %c0_i32 = arith.constant 0 : i32
    %c0_i32_0 = arith.constant 0 : i32
    %c0_i32_1 = arith.constant 0 : i32
    return %c0_i32, %c0_i32_0 : i32, i32
  }
  func.func @transform_3(%arg0: i32) -> (i32, i32) {
    %c0_i32 = arith.constant 0 : i32
    %c0_i32_0 = arith.constant 0 : i32
    %c0_i32_1 = arith.constant 0 : i32
    return %c0_i32, %c0_i32_0 : i32, i32
  }
  func.func @transform_4(%arg0: i32) -> (i32, i32) {
    %c0_i32 = arith.constant 0 : i32
    %c0_i32_0 = arith.constant 0 : i32
    return %arg0, %c0_i32 : i32, i32
  }
}

module attributes {stable_mosaic.version = 11 : i64} {
  func.func @_layernorm_rowwise_kernel(%arg0: i32, %arg1: memref<16x32xf32, #tpu.memory_space<vmem>>, %arg2: memref<1x32xf32, #tpu.memory_space<vmem>>, %arg3: memref<1x32xf32, #tpu.memory_space<vmem>>, %arg4: memref<16x32xf32, #tpu.memory_space<vmem>>) attributes {dimension_semantics = [#tpu.dimension_semantics<arbitrary>], iteration_bounds = array<i64: 1>, scalar_prefetch = 0 : i64, scratch_operands = 0 : i64, tpu.core_type = #tpu.core_type<tc>, window_params = [{transform_indices = @transform_0, window_bounds = array<i64: 16, 32>}, {pipeline_mode = #tpu.pipeline_mode<synchronous>, transform_indices = @transform_1, window_bounds = array<i64: 1, 32>}, {pipeline_mode = #tpu.pipeline_mode<synchronous>, transform_indices = @transform_2, window_bounds = array<i64: 1, 32>}, {transform_indices = @transform_3, window_bounds = array<i64: 16, 32>}]} {
    %c0 = arith.constant 0 : index
    %c0_0 = arith.constant 0 : index
    %0 = vector.load %arg1[%c0, %c0_0] : memref<16x32xf32, #tpu.memory_space<vmem>>, vector<16x32xf32>
    %cst = arith.constant dense<0.000000e+00> : vector<16xf32>
    %1 = vector.multi_reduction <add>, %0, %cst [1] : vector<16x32xf32> to vector<16xf32>
    %2 = vector.shape_cast %1 : vector<16xf32> to vector<16x1xf32>
    %cst_1 = arith.constant 3.200000e+01 : f32
    %3 = vector.broadcast %cst_1 : f32 to vector<16x1xf32>
    %4 = arith.divf %2, %3 : vector<16x1xf32>
    %5 = vector.broadcast %4 : vector<16x1xf32> to vector<16x32xf32>
    %6 = arith.subf %0, %5 : vector<16x32xf32>
    %7 = arith.mulf %6, %6 : vector<16x32xf32>
    %cst_2 = arith.constant dense<0.000000e+00> : vector<16xf32>
    %8 = vector.multi_reduction <add>, %7, %cst_2 [1] : vector<16x32xf32> to vector<16xf32>
    %9 = vector.shape_cast %8 : vector<16xf32> to vector<16x1xf32>
    %cst_3 = arith.constant 0.0322580636 : f32
    %10 = vector.broadcast %cst_3 : f32 to vector<16x1xf32>
    %11 = arith.mulf %9, %10 : vector<16x1xf32>
    %cst_4 = arith.constant 9.99999974E-6 : f32
    %12 = vector.broadcast %cst_4 : f32 to vector<16x1xf32>
    %13 = arith.addf %11, %12 : vector<16x1xf32>
    %14 = math.rsqrt %13 : vector<16x1xf32>
    %15 = arith.mulf %4, %14 : vector<16x1xf32>
    %16 = vector.broadcast %15 : vector<16x1xf32> to vector<16x32xf32>
    %17 = arith.subf %0, %16 : vector<16x32xf32>
    %c0_5 = arith.constant 0 : index
    %c0_6 = arith.constant 0 : index
    %18 = vector.load %arg2[%c0_5, %c0_6] : memref<1x32xf32, #tpu.memory_space<vmem>>, vector<1x32xf32>
    %19 = vector.broadcast %18 : vector<1x32xf32> to vector<16x32xf32>
    %20 = arith.mulf %19, %17 : vector<16x32xf32>
    %c0_7 = arith.constant 0 : index
    %c0_8 = arith.constant 0 : index
    %21 = vector.load %arg3[%c0_7, %c0_8] : memref<1x32xf32, #tpu.memory_space<vmem>>, vector<1x32xf32>
    %22 = vector.broadcast %21 : vector<1x32xf32> to vector<16x32xf32>
    %23 = arith.addf %20, %22 : vector<16x32xf32>
    %c0_9 = arith.constant 0 : index
    %c0_10 = arith.constant 0 : index
    %24 = vector.load %arg4[%c0_9, %c0_10] : memref<16x32xf32, #tpu.memory_space<vmem>>, vector<16x32xf32>
    tpu.vector_store %arg4[%c0_9, %c0_10], %23 {strides = array<i32>} : memref<16x32xf32, #tpu.memory_space<vmem>>, vector<16x32xf32>,
    return
  }
  func.func @transform_0(%arg0: i32) -> (i32, i32) {
    %c0_i32 = arith.constant 0 : i32
    %c0_i32_0 = arith.constant 0 : i32
    return %arg0, %c0_i32 : i32, i32
  }
  func.func @transform_1(%arg0: i32) -> (i32, i32) {
    %c0_i32 = arith.constant 0 : i32
    %c0_i32_0 = arith.constant 0 : i32
    %c0_i32_1 = arith.constant 0 : i32
    return %c0_i32, %c0_i32_0 : i32, i32
  }
  func.func @transform_2(%arg0: i32) -> (i32, i32) {
    %c0_i32 = arith.constant 0 : i32
    %c0_i32_0 = arith.constant 0 : i32
    %c0_i32_1 = arith.constant 0 : i32
    return %c0_i32, %c0_i32_0 : i32, i32
  }
  func.func @transform_3(%arg0: i32) -> (i32, i32) {
    %c0_i32 = arith.constant 0 : i32
    %c0_i32_0 = arith.constant 0 : i32
    return %arg0, %c0_i32 : i32, i32
  }
}

</mosaic_0001>

<bundles_post_ra>
// kernel: tpu_custom_call.1
= control target key start
LH: loop header
LB: loop body
LE: loop exit
PB: predicated region body
PF: predicated region fallthrough
CT: control target
= control target key end

     0   :  { %9 = vsyncpa [#allocation3], 0  ;;  %s908_s0 = inlined_call_operand.hbm [shape: f32[4,128], index: 0, kind: input, shape index: {}]   ;;  %s909_s1 = inlined_call_operand.vmem [shape: f32[1,128], index: 1, kind: input, shape index: {}]   ;;  %s910_s2 = inlined_call_operand.vmem [shape: f32[1,128], index: 2, kind: input, shape index: {}]   ;;  %s911_s3 = inlined_call_operand.hbm [shape: bf16[128,128], index: 3, kind: input, shape index: {}]   ;;  %s912_s4 = inlined_call_operand.hbm [shape: f32[4,128], index: 4, kind: output, shape index: {}]  }
   0x1   :  { %10 = vsyncpa [#allocation6], 0 }
   0x2   :  { %11 = vsyncpa [#allocation4], 0  ;;  %s696_s15 = smov [#allocation2]   ;;  %s697_s17 = smov [#allocation5]  }
   0x3   :  { %s18_s16 = sshll.u32 %s696_s15, 4  ;;  %s31_s18 = sshll.u32 %s697_s17, 4  ;;  %s19_s16 = int_to_ptr.vmem [resolvable:$true] %s18_s16  ;;  %s728_s18 = int_to_ptr.vmem [resolvable:$true] %s31_s18 }
   0x4   :  { %s624_s21 = scalar_lea.hbm %s908_s0, 64 }
   0x5   :  { %p625_p0 = scmp.ne.s32.totalorder %s908_s0, %s624_s21  ;;  %p628_p1 = scmp.lt.u32.totalorder %s624_s21, %s908_s0 }
   0x7   :  { %p630_p2 = pnand %p628_p1, %p625_p0 }
   0x9   :  { %633 = shalt.err (!%p630_p2)
}
   0xa   :  { %s634_s26 = scalar_lea.vmem %s19_s16, 64  ;;  %p639_p4 = scmp.lt.s32.totalorder %s19_s16, %s19_s16 }
   0xb   :  { %p635_p3 = scmp.ne.s32.totalorder %s19_s16, %s634_s26  ;;  %p640_p5 = scmp.lt.s32.totalorder %s634_s26, %s634_s26 }
   0xd   :  { %p641_p6 = por %p640_p5, %p639_p4 }
   0xf   :  { %p642_p7 = pnand %p641_p6, %p635_p3 }
  0x11   :  { %645 = shalt.err (!%p642_p7)
}
  0x12   :  { %21 = dma.hbm_to_vmem [thread:$0]  %s908_s0, 64, %s19_s16, [#allocation3]  }
  0x13   :  { %s646_s5 = scalar_lea.hbm %s911_s3, 1024 }
  0x14   :  { %p647_p8 = scmp.ne.s32.totalorder %s911_s3, %s646_s5  ;;  %p650_p9 = scmp.lt.u32.totalorder %s646_s5, %s911_s3 }
  0x16   :  { %p652_p10 = pnand %p650_p9, %p647_p8 }
  0x18   :  { %655 = shalt.err (!%p652_p10)
}
  0x19   :  { %s656_s10 = scalar_lea.vmem %s728_s18, 1024  ;;  %p661_p12 = scmp.lt.s32.totalorder %s728_s18, %s728_s18 }
  0x1a   :  { %p657_p11 = scmp.ne.s32.totalorder %s728_s18, %s656_s10  ;;  %p662_p13 = scmp.lt.s32.totalorder %s656_s10, %s656_s10 }
  0x1c   :  { %p663_p0 = por %p662_p13, %p661_p12 }
  0x1e   :  { %p664_p1 = pnand %p663_p0, %p657_p11 }
  0x20   :  { %667 = shalt.err (!%p664_p1)
}
  0x21   :  { %s698_s0 = smov 64   ;;  %s699_s11 = smov 4  }
  0x22   :  { %37 = dma.hbm_to_vmem [thread:$0]  %s911_s3, 1024, %s728_s18, [#allocation6], %s698_s0, %s698_s0, %s699_s11  }
  0x23   :  { %690 = dma.done.wait [#allocation3], 64  }
  0x24   :  { %691 = vsyncadd [#allocation3], 4294967232 }
  0x25   :  { %692 = dma.done.wait [#allocation6], 1024  }
  0x26   :  { %693 = vsyncadd [#allocation6], 4294966272  ;;  %v700_v0 = vmov 0.0   ;;  %vm701_vm0 = vmmov 0   ;;  %v765_v1 = vld [vmem:[#allocation5] sm:$0xff]   ;;  %v768_v2 = vld [vmem:[#allocation5 + $0x8] sm:$0xff]  }
  0x27   :  { %471 = vmatprep.subr.bf16.mxu0 %v700_v0  ;;  %487 = vmatprep.mubr.msk.bf16.mxu0 %vm701_vm0, %v700_v0  ;;  %v774_v3 = vld [vmem:[#allocation5 + $0x10] sm:$0xff]   ;;  %v780_v4 = vld [vmem:[#allocation5 + $0x18] sm:$0xff]   ;;  %v786_v5 = vld [vmem:[#allocation5 + $0x20] sm:$0xff]   ;;  %s702_s17 = smov [#allocation7]  }
  0x28   :  { %531 = vmatprep.subr.bf16.mxu1 %v700_v0  ;;  %547 = vmatprep.mubr.msk.bf16.mxu1 %vm701_vm0, %v700_v0  ;;  %v788_v6 = vld [vmem:[#allocation2] sm:$0xf]  ;;  %v796_v8 = vld [vmem:[#allocation5 + $0x28] sm:$0xff]   ;;  %v802_v10 = vld [vmem:[#allocation5 + $0x30] sm:$0xff]   ;;  %s397_s18 = sshll.u32 %s702_s17, 4  ;;  %s398_s18 = int_to_ptr.vmem [resolvable:$true] %s397_s18 }
  0x29   :  { %472 = vmatpush3.bf16.msra.mxu0 %v765_v1  ;;  %532 = vmatpush3.bf16.msra.mxu1 %v765_v1  ;;  %v62_v7 = vpack.c.bf16 %v788_v6, %v788_v6  ;;  %v809_v12 = vld [vmem:[#allocation5 + $0x38] sm:$0xff]   ;;  %s668_s19 = scalar_lea.vmem %s398_s18, 64  ;;  %p673_p3 = scmp.lt.s32.totalorder %s398_s18, %s398_s18 }
  0x2a   :  { %473 = vmatprep.subr.bf16.mxu0 %v700_v0  ;;  %533 = vmatprep.subr.bf16.mxu1 %v700_v0  ;;  %v415_v39 = vld [vmem:[%s909_s1] ss:$0 sm:$0xff]  ;;  %p669_p2 = scmp.ne.s32.totalorder %s398_s18, %s668_s19  ;;  %p674_p4 = scmp.lt.s32.totalorder %s668_s19, %s668_s19 }
  0x2b   :  { %v63_v9 = vunpack.c.l.bf16 %v62_v7  ;;  %v416_v41 = vld [vmem:[%s910_s2] ss:$0 sm:$0xff] }
  0x2c   :  { %p675_p5 = por %p674_p4, %p673_p3 }
  0x2d   :  { %474 = vmatpush3.bf16.msra.mxu0 %v768_v2  ;;  %534 = vmatpush3.bf16.msra.mxu1 %v768_v2  ;;  %v64_v11 = vsub.f32 %v788_v6, %v63_v9 }
  0x2e   :  { %475 = vmatprep.subr.bf16.mxu0 %v700_v0  ;;  %535 = vmatprep.subr.bf16.mxu1 %v700_v0  ;;  %p676_p6 = pnand %p675_p5, %p669_p2 }
  0x2f   :  { %v65_v13 = vpack.c.bf16 %v64_v11, %v64_v11 }
  0x31   :  { %476 = vmatpush3.bf16.msra.mxu0 %v774_v3  ;;  %536 = vmatpush3.bf16.msra.mxu1 %v774_v3  ;;  %v66_v14 = vunpack.c.l.bf16 %v65_v13 }
  0x32   :  { %477 = vmatprep.subr.bf16.mxu0 %v700_v0  ;;  %537 = vmatprep.subr.bf16.mxu1 %v700_v0 }
  0x33   :  { %v67_v15 = vsub.f32 %v64_v11, %v66_v14 }
  0x35   :  { %478 = vmatpush3.bf16.msra.mxu0 %v780_v4  ;;  %538 = vmatpush3.bf16.msra.mxu1 %v780_v4  ;;  %v68_v16 = vpack.c.bf16 %v67_v15, %v67_v15 }
  0x36   :  { %479 = vmatprep.subr.bf16.mxu0 %v700_v0  ;;  %539 = vmatprep.subr.bf16.mxu1 %v700_v0 }
  0x39   :  { %480 = vmatpush3.bf16.msra.mxu0 %v786_v5  ;;  %540 = vmatpush3.bf16.msra.mxu1 %v786_v5 }
  0x3a   :  { %481 = vmatprep.subr.bf16.mxu0 %v700_v0  ;;  %541 = vmatprep.subr.bf16.mxu1 %v700_v0 }
  0x3d   :  { %482 = vmatpush3.bf16.msra.mxu0 %v796_v8  ;;  %542 = vmatpush3.bf16.msra.mxu1 %v796_v8 }
  0x3e   :  { %483 = vmatprep.subr.bf16.mxu0 %v700_v0  ;;  %543 = vmatprep.subr.bf16.mxu1 %v700_v0 }
  0x41   :  { %484 = vmatpush3.bf16.msra.mxu0 %v802_v10  ;;  %544 = vmatpush3.bf16.msra.mxu1 %v802_v10 }
  0x42   :  { %485 = vmatprep.subr.bf16.mxu0 %v700_v0  ;;  %545 = vmatprep.subr.bf16.mxu1 %v700_v0 }
  0x45   :  { %486 = vmatpush3.bf16.msra.mxu0 %v809_v12  ;;  %546 = vmatpush3.bf16.msra.mxu1 %v809_v12 }
  0x46   :  { %491 = vmatprep.subr.bf16.mxu0 %v700_v0  ;;  %551 = vmatprep.subr.bf16.mxu1 %v700_v0 }
  0x48   :  { %488 = vmatmul.mubr.bf16.vlgmr.msra.gmra.mrb[0].mxu0 %v65_v13 }
  0x49   :  { %492 = vmatpush3.bf16.msra.mxu0 %v765_v1  ;;  %507 = vmatprep.mubr.msk.bf16.mxu0 %vm701_vm0, %v700_v0 }
  0x4a   :  { %493 = vmatprep.subr.bf16.mxu0 %v700_v0 }
  0x4d   :  { %494 = vmatpush3.bf16.msra.mxu0 %v768_v2 }
  0x4e   :  { %495 = vmatprep.subr.bf16.mxu0 %v700_v0 }
  0x51   :  { %496 = vmatpush3.bf16.msra.mxu0 %v774_v3 }
  0x52   :  { %497 = vmatprep.subr.bf16.mxu0 %v700_v0 }
  0x55   :  { %498 = vmatpush3.bf16.msra.mxu0 %v780_v4 }
  0x56   :  { %499 = vmatprep.subr.bf16.mxu0 %v700_v0 }
  0x59   :  { %500 = vmatpush3.bf16.msra.mxu0 %v786_v5 }
  0x5a   :  { %501 = vmatprep.subr.bf16.mxu0 %v700_v0 }
  0x5d   :  { %502 = vmatpush3.bf16.msra.mxu0 %v796_v8 }
  0x5e   :  { %503 = vmatprep.subr.bf16.mxu0 %v700_v0 }
  0x61   :  { %504 = vmatpush3.bf16.msra.mxu0 %v802_v10 }
  0x62   :  { %505 = vmatprep.subr.bf16.mxu0 %v700_v0 }
  0x65   :  { %506 = vmatpush3.bf16.msra.mxu0 %v809_v12 }
  0x66   :  { %511 = vmatprep.subr.bf16.mxu0 %v700_v0 }
  0x68   :  { %508 = vmatmul.mubr.bf16.vlgmr.msra.gmra.mrb[0].mxu0 %v62_v7 }
  0x69   :  { %512 = vmatpush3.bf16.msra.mxu0 %v765_v1  ;;  %527 = vmatprep.mubr.msk.bf16.mxu0 %vm701_vm0, %v700_v0 }
  0x6a   :  { %513 = vmatprep.subr.bf16.mxu0 %v700_v0 }
  0x6d   :  { %514 = vmatpush3.bf16.msra.mxu0 %v768_v2 }
  0x6e   :  { %515 = vmatprep.subr.bf16.mxu0 %v700_v0 }
  0x71   :  { %516 = vmatpush3.bf16.msra.mxu0 %v774_v3 }
  0x72   :  { %517 = vmatprep.subr.bf16.mxu0 %v700_v0 }
  0x75   :  { %518 = vmatpush3.bf16.msra.mxu0 %v780_v4 }
  0x76   :  { %519 = vmatprep.subr.bf16.mxu0 %v700_v0 }
  0x79   :  { %520 = vmatpush3.bf16.msra.mxu0 %v786_v5 }
  0x7a   :  { %521 = vmatprep.subr.bf16.mxu0 %v700_v0 }
  0x7d   :  { %522 = vmatpush3.bf16.msra.mxu0 %v796_v8 }
  0x7e   :  { %523 = vmatprep.subr.bf16.mxu0 %v700_v0 }
  0x81   :  { %524 = vmatpush3.bf16.msra.mxu0 %v802_v10 }
  0x82   :  { %525 = vmatprep.subr.bf16.mxu0 %v700_v0 }
  0x85   :  { %526 = vmatpush3.bf16.msra.mxu0 %v809_v12 }
  0x88   :  { %528 = vmatmul.mubr.bf16.vlgmr.msra.gmra.mrb[0].mxu0 %v68_v16 }
 0x15b   :  { %v231_v17 = vpop.f32.mrb[0].mxu0 }
 0x15c   :  { %v238_v18 = vmul.f32 0.03125, %v231_v17  ;;  %v529_v19 = vpop.f32.mrb[1].mxu0 }
 0x15d   :  { %v234_v20 = vpop.f32.mrb[2].mxu0 }
 0x15e   :  { %v239_v21 = vsub.f32 %v788_v6, %v238_v18  ;;  %v530_v22 = vpop.f32.mrb[3].mxu0 }
 0x160   :  { %v240_v23 = vmul.f32 %v239_v21, %v239_v21 }
 0x162   :  { %v241_v24 = vpack.c.bf16 %v240_v23, %v240_v23 }
 0x164   :  { %v242_v25 = vunpack.c.l.bf16 %v241_v24 }
 0x166   :  { %v243_v26 = vsub.f32 %v240_v23, %v242_v25 }
 0x168   :  { %v244_v27 = vpack.c.bf16 %v243_v26, %v243_v26 }
 0x16a   :  { %548 = vmatmul.mubr.bf16.vlgmr.msra.gmra.mrb[0].mxu1 %v244_v27  ;;  %v245_v28 = vunpack.c.l.bf16 %v244_v27 }
 0x16b   :  { %552 = vmatpush3.bf16.msra.mxu1 %v765_v1  ;;  %567 = vmatprep.mubr.msk.bf16.mxu1 %vm701_vm0, %v700_v0 }
 0x16c   :  { %553 = vmatprep.subr.bf16.mxu1 %v700_v0  ;;  %v246_v29 = vsub.f32 %v243_v26, %v245_v28 }
 0x16e   :  { %v247_v30 = vpack.c.bf16 %v246_v29, %v246_v29 }
 0x16f   :  { %554 = vmatpush3.bf16.msra.mxu1 %v768_v2 }
 0x170   :  { %555 = vmatprep.subr.bf16.mxu1 %v700_v0 }
 0x173   :  { %556 = vmatpush3.bf16.msra.mxu1 %v774_v3 }
 0x174   :  { %557 = vmatprep.subr.bf16.mxu1 %v700_v0 }
 0x177   :  { %558 = vmatpush3.bf16.msra.mxu1 %v780_v4 }
 0x178   :  { %559 = vmatprep.subr.bf16.mxu1 %v700_v0 }
 0x17b   :  { %560 = vmatpush3.bf16.msra.mxu1 %v786_v5 }
 0x17c   :  { %561 = vmatprep.subr.bf16.mxu1 %v700_v0 }
 0x17f   :  { %562 = vmatpush3.bf16.msra.mxu1 %v796_v8 }
 0x180   :  { %563 = vmatprep.subr.bf16.mxu1 %v700_v0 }
 0x183   :  { %564 = vmatpush3.bf16.msra.mxu1 %v802_v10 }
 0x184   :  { %565 = vmatprep.subr.bf16.mxu1 %v700_v0 }
 0x187   :  { %566 = vmatpush3.bf16.msra.mxu1 %v809_v12 }
 0x188   :  { %571 = vmatprep.subr.bf16.mxu1 %v700_v0 }
 0x18a   :  { %568 = vmatmul.mubr.bf16.vlgmr.msra.gmra.mrb[0].mxu1 %v241_v24 }
 0x18b   :  { %572 = vmatpush3.bf16.msra.mxu1 %v765_v1  ;;  %587 = vmatprep.mubr.msk.bf16.mxu1 %vm701_vm0, %v700_v0 }
 0x18c   :  { %573 = vmatprep.subr.bf16.mxu1 %v700_v0 }
 0x18f   :  { %574 = vmatpush3.bf16.msra.mxu1 %v768_v2 }
 0x190   :  { %575 = vmatprep.subr.bf16.mxu1 %v700_v0 }
 0x193   :  { %576 = vmatpush3.bf16.msra.mxu1 %v774_v3 }
 0x194   :  { %577 = vmatprep.subr.bf16.mxu1 %v700_v0 }
 0x197   :  { %578 = vmatpush3.bf16.msra.mxu1 %v780_v4 }
 0x198   :  { %579 = vmatprep.subr.bf16.mxu1 %v700_v0 }
 0x19b   :  { %580 = vmatpush3.bf16.msra.mxu1 %v786_v5 }
 0x19c   :  { %581 = vmatprep.subr.bf16.mxu1 %v700_v0 }
 0x19f   :  { %582 = vmatpush3.bf16.msra.mxu1 %v796_v8 }
 0x1a0   :  { %583 = vmatprep.subr.bf16.mxu1 %v700_v0 }
 0x1a3   :  { %584 = vmatpush3.bf16.msra.mxu1 %v802_v10 }
 0x1a4   :  { %585 = vmatprep.subr.bf16.mxu1 %v700_v0 }
 0x1a7   :  { %586 = vmatpush3.bf16.msra.mxu1 %v809_v12 }
 0x1aa   :  { %588 = vmatmul.mubr.bf16.vlgmr.msra.gmra.mrb[0].mxu1 %v247_v30 }
 0x27d   :  { %v362_v31 = vpop.f32.mrb[0].mxu1 }
 0x27e   :  { %v369_v32 = vmul.f32 0.032258064, %v362_v31  ;;  %v589_v33 = vpop.f32.mrb[1].mxu1 }
 0x27f   :  { %v365_v34 = vpop.f32.mrb[2].mxu1 }
 0x280   :  { %v370_v35 = vadd.f32 1e-05, %v369_v32  ;;  %v590_v36 = vpop.f32.mrb[3].mxu1 }
 0x282   :  { %622 = vrsqrt.f32 %v370_v35 }
 0x28c   :  { %v623_v37 = vpop.eup %622 }
 0x28d   :  { %v372_v38 = vmul.f32 %v623_v37, %v238_v18 }
 0x28f   :  { %v373_v40 = vsub.f32 %v788_v6, %v372_v38 }
 0x291   :  { %v381_v42 = vmul.f32 %v415_v39, %v373_v40 }
 0x293   :  { %v389_v43 = vadd.f32 %v416_v41, %v381_v42 }
 0x295   :  { %390 = vst [vmem:[#allocation7] sm:$0xf] %v389_v43 }
 0x296   :  { %679 = shalt.err (!%p676_p6)
}
 0x297   :  { %s680_s21 = scalar_lea.hbm %s912_s4, 64 }
 0x298   :  { %p681_p7 = scmp.ne.s32.totalorder %s912_s4, %s680_s21  ;;  %p684_p8 = scmp.lt.u32.totalorder %s680_s21, %s912_s4 }
 0x29a   :  { %p686_p9 = pnand %p684_p8, %p681_p7 }
 0x29c   :  { %689 = shalt.err (!%p686_p9)
}
 0x29d   :  { %400 = dma.vmem_to_hbm [thread:$0]  %s398_s18, 64, %s912_s4, [#allocation4]  }
 0x29e   :  { %694 = dma.done.wait [#allocation4], 64  }
 0x29f   :  { %695 = vsyncadd [#allocation4], 4294967232 }
 0x2a0   :  { %404 = vsyncpa [#allocation3], 1 }
 0x2a1   :  { %405 = vsyncpa [#allocation6], 1 }
 0x2a2   :  { %406 = vsyncpa [#allocation4], 1 }

// kernel: tpu_custom_call.1
= control target key start
LH: loop header
LB: loop body
LE: loop exit
PB: predicated region body
PF: predicated region fallthrough
CT: control target
= control target key end

     0   :  { %8 = vsyncpa [#allocation3], 0  ;;  %s222_s0 = inlined_call_operand.hbm [shape: f32[16,32], index: 0, kind: input, shape index: {}]   ;;  %s223_s1 = inlined_call_operand.vmem [shape: f32[1,32], index: 1, kind: input, shape index: {}]   ;;  %s224_s2 = inlined_call_operand.vmem [shape: f32[1,32], index: 2, kind: input, shape index: {}]   ;;  %s225_s3 = inlined_call_operand.hbm [shape: f32[16,32], index: 3, kind: output, shape index: {}]  }
   0x1   :  { %9 = vsyncpa [#allocation4], 0  ;;  %s156_s12 = smov [#allocation2]   ;;  %s108_s16 = scalar_lea.hbm %s222_s0, 256 }
   0x2   :  { %s15_s13 = sshll.u32 %s156_s12, 4  ;;  %p109_p0 = scmp.ne.s32.totalorder %s222_s0, %s108_s16  ;;  %s16_s13 = int_to_ptr.vmem [resolvable:$true] %s15_s13 }
   0x3   :  { %p112_p1 = scmp.lt.u32.totalorder %s108_s16, %s222_s0 }
   0x5   :  { %p114_p2 = pnand %p112_p1, %p109_p0 }
   0x7   :  { %117 = shalt.err (!%p114_p2)
}
   0x8   :  { %s118_s21 = scalar_lea.vmem %s16_s13, 256  ;;  %p123_p4 = scmp.lt.s32.totalorder %s16_s13, %s16_s13 }
   0x9   :  { %p119_p3 = scmp.ne.s32.totalorder %s16_s13, %s118_s21  ;;  %p124_p5 = scmp.lt.s32.totalorder %s118_s21, %s118_s21 }
   0xb   :  { %p125_p6 = por %p124_p5, %p123_p4 }
   0xd   :  { %p126_p7 = pnand %p125_p6, %p119_p3 }
   0xf   :  { %129 = shalt.err (!%p126_p7)
}
  0x10   :  { %s157_s22 = smov 128   ;;  %s158_s23 = smov 8  }
  0x11   :  { %21 = dma.hbm_to_vmem [thread:$0]  %s222_s0, 256, %s16_s13, [#allocation3], %s157_s22, %s157_s22, %s158_s23  }
  0x12   :  { %152 = dma.done.wait [#allocation3], 256  }
  0x13   :  { %153 = vsyncadd [#allocation3], 4294967040  ;;  %vm31_vm0 = vcmask 261120   ;;  %v29_v0 = vld [vmem:[#allocation2] sm:$0xff]  ;;  %v30_v1 = vld [vmem:[#allocation2 + $0x8] sm:$0xff]  ;;  %s159_s29 = smov [#allocation5]  }
  0x14   :  { %v32_v2 = vsel %vm31_vm0, %v29_v0, 0.0  ;;  %v35_v3 = vsel %vm31_vm0, %v30_v1, 0.0  ;;  %v98_v22 = vld [vmem:[%s223_s1] ss:$0 sm:$0xff]  ;;  %s86_s30 = sshll.u32 %s159_s29, 4  ;;  %s87_s30 = int_to_ptr.vmem [resolvable:$true] %s86_s30 }
  0x15   :  { %33 = vadd.xlane.f32.xlu0 %v32_v2  ;;  %v99_v25 = vld [vmem:[%s224_s2] ss:$0 sm:$0xff]  ;;  %s130_s1 = scalar_lea.vmem %s87_s30, 256  ;;  %p135_p9 = scmp.lt.s32.totalorder %s87_s30, %s87_s30 }
  0x16   :  { %p131_p8 = scmp.ne.s32.totalorder %s87_s30, %s130_s1  ;;  %p136_p10 = scmp.lt.s32.totalorder %s130_s1, %s130_s1 }
  0x18   :  { %p137_p11 = por %p136_p10, %p135_p9 }
  0x19   :  { %36 = vadd.xlane.f32.xlu0 %v35_v3 }
  0x1a   :  { %p138_p12 = pnand %p137_p11, %p131_p8 }
  0xa2   :  { %v34_v4 = vpop.xlane.xlu0 %33 }
  0xa3   :  { %v39_v5 = vmul.f32 0.03125, %v34_v4 }
  0xa5   :  { %v41_v6 = vsub.f32 %v29_v0, %v39_v5 }
  0xa6   :  { %v37_v7 = vpop.xlane.xlu0 %36 }
  0xa7   :  { %v40_v8 = vmul.f32 0.03125, %v37_v7  ;;  %v43_v9 = vmul.f32 %v41_v6, %v41_v6 }
  0xa9   :  { %v42_v10 = vsub.f32 %v30_v1, %v40_v8  ;;  %v45_v11 = vsel %vm31_vm0, %v43_v9, 0.0 }
  0xaa   :  { %46 = vadd.xlane.f32.xlu1 %v45_v11 }
  0xab   :  { %v44_v12 = vmul.f32 %v42_v10, %v42_v10 }
  0xad   :  { %v48_v13 = vsel %vm31_vm0, %v44_v12, 0.0 }
  0xae   :  { %49 = vadd.xlane.f32.xlu1 %v48_v13 }
 0x137   :  { %v47_v14 = vpop.xlane.xlu1 %46 }
 0x138   :  { %v51_v15 = vmul.f32 0.032258064, %v47_v14 }
 0x13a   :  { %v53_v16 = vadd.f32 1e-05, %v51_v15 }
 0x13b   :  { %v50_v17 = vpop.xlane.xlu1 %49 }
 0x13c   :  { %104 = vrsqrt.f32 %v53_v16  ;;  %v52_v18 = vmul.f32 0.032258064, %v50_v17 }
 0x13e   :  { %v54_v19 = vadd.f32 1e-05, %v52_v18 }
 0x140   :  { %106 = vrsqrt.f32 %v54_v19 }
 0x146   :  { %v105_v20 = vpop.eup %104 }
 0x147   :  { %v57_v21 = vmul.f32 %v105_v20, %v39_v5 }
 0x149   :  { %v59_v23 = vsub.f32 %v29_v0, %v57_v21 }
 0x14a   :  { %v107_v24 = vpop.eup %106 }
 0x14b   :  { %v58_v26 = vmul.f32 %v107_v24, %v40_v8  ;;  %v68_v27 = vmul.f32 %v98_v22, %v59_v23 }
 0x14d   :  { %v60_v28 = vsub.f32 %v30_v1, %v58_v26  ;;  %v77_v29 = vadd.f32 %v99_v25, %v68_v27 }
 0x14f   :  { %v69_v30 = vmul.f32 %v98_v22, %v60_v28  ;;  %79 = vst.msk [vmem:[#allocation5] sm:$0xff] %vm31_vm0, %v77_v29 }
 0x151   :  { %v78_v31 = vadd.f32 %v99_v25, %v69_v30 }
 0x153   :  { %80 = vst.msk [vmem:[#allocation5 + $0x8] sm:$0xff] %vm31_vm0, %v78_v31 }
 0x154   :  { %141 = shalt.err (!%p138_p12)
}
 0x155   :  { %s142_s5 = scalar_lea.hbm %s225_s3, 256 }
 0x156   :  { %p143_p13 = scmp.ne.s32.totalorder %s225_s3, %s142_s5  ;;  %p146_p0 = scmp.lt.u32.totalorder %s142_s5, %s225_s3 }
 0x158   :  { %p148_p1 = pnand %p146_p0, %p143_p13 }
 0x15a   :  { %151 = shalt.err (!%p148_p1)
}
 0x15b   :  { %92 = dma.vmem_to_hbm [thread:$0]  %s87_s30, 256, %s225_s3, [#allocation4], %s157_s22, %s157_s22, %s158_s23  }
 0x15c   :  { %154 = dma.done.wait [#allocation4], 256  }
 0x15d   :  { %155 = vsyncadd [#allocation4], 4294967040 }
 0x15e   :  { %96 = vsyncpa [#allocation3], 1 }
 0x15f   :  { %97 = vsyncpa [#allocation4], 1 }

</bundles_post_ra>
